<compile_context>
chip_gen: v7x
topology: tpu7x:2x2x1
jax: 0.10.0
libtpu: 0.0.40
codegen_flags: <defaults>
</compile_context>

<pallas_src>
import functools

import jax
import jax.numpy as jnp
from jax.experimental import pallas as pl
from jax.experimental.pallas import tpu as pltpu

NEG_SLOPE = 0.01  # torch.nn.LeakyReLU default negative_slope


def _lrelu(v):
    return jnp.where(v > 0, v, NEG_SLOPE * v)


def _round_up(n, m):
    return ((n + m - 1) // m) * m


def _gender_kernel(x_ref, w1_ref, w2g_ref, w2a_ref, bvec_ref, bout_ref, out_ref):
    # Dropout(p) is identity at inference (eval mode).
    # TODO(synk): pretrained ECAPA encoder, training-time audio augmentation and
    # training-mode dropout are not implemented; kernel consumes encoded features.
    H = w2g_ref.shape[0]

    xv = x_ref[...]
    if xv.dtype == jnp.bfloat16:
        a0_lo = _lrelu(xv)                                   # native bf16 VALU (v6e/v7x)
    else:
        a0_lo = _lrelu(xv.astype(jnp.float32)).astype(jnp.bfloat16)

    bv = bvec_ref[...]   # (6, H) f32: [b1_gen, b2_gen, b1_age, b2_age, wo_gen, wo_age]
    bo = bout_ref[...]   # (1, 2) f32: [bo_gen, bo_age]

    # Fused layer 1 for both heads: one (tile_b, D) x (D, 2H) MXU pass
    # (halves the weight-stage/push sequences; fills the 256-wide MXU N dim).
    h1 = jnp.dot(a0_lo, w1_ref[...], preferred_element_type=jnp.float32)  # (tile_b, 2H)

    def head(h1_half, w2_ref, b1, b2, wo_row, bo_col):
        # Linear (bn0 folded) -> LeakyReLU
        h = _lrelu(h1_half + b1)
        # Linear (bn1 folded) -> LeakyReLU
        h = jnp.dot(h.astype(jnp.bfloat16), w2_ref[...],
                    preferred_element_type=jnp.float32) + b2
        h = _lrelu(h)
        # 1-neuron 'out' Linear (bn2 folded): VPU multiply + lane reduce,
        # keeps the MXU free and the result lane-dense.
        y = jnp.sum(h * wo_row, axis=-1)                     # (tile_b,)
        return y[None, :] + bo_col                           # (1, tile_b)

    gen = head(h1[:, :H], w2g_ref, bv[0:1, :], bv[1:2, :], bv[4:5, :], bo[:, 0:1])
    age = head(h1[:, H:], w2a_ref, bv[2:3, :], bv[3:4, :], bv[5:6, :], bo[:, 1:2])

    # Single (8, tile_b) lane-dense output block: sublane 0 = gen, sublane 1 = age.
    out_ref[0:2, :] = jnp.concatenate([gen, age], axis=0)


def simple_gender_forward(x, params, max_tile_b=1024, core_parallel=False):
    """x: (B, 1, D) or (B, D) float32/bfloat16 encoded features.
    Returns (age, gen): two (B,) float32 logit vectors.

    max_tile_b: batch-tile cap. 1024-2048 is a good choice on v5e/v6e
    (128 MiB VMEM); keep 512-1024 on v7x (64 MiB VMEM).
    core_parallel: set True on v7x (2 TensorCores/chip) with >= 2 batch tiles
    to shard the batch grid axis across cores explicitly.
    """
    if x.ndim == 3:
        x = jnp.squeeze(x, axis=1)                           # (B, 1, D) -> (B, D)
    B, D = x.shape
    w1cat, w2g, w2a, bvec, bout2 = params
    H = w2g.shape[0]

    # Balanced batch tiles: bound padding waste to < one sublane group instead
    # of up to a whole tile; keep tiles multiples of 16 (bf16 sublane packing).
    num_tiles = max(1, -(-B // max_tile_b))
    tile_b = _round_up(-(-B // num_tiles), 16)
    padded_b = tile_b * num_tiles
    # No wrapper-side cast/pad: the kernel upcasts as needed, and the ragged
    # last tile's out-of-bounds rows yield garbage logits sliced off by [:B].

    flops = 2 * padded_b * (D * 2 * H + 2 * H * H + 2 * H)
    bytes_accessed = (B * D * x.dtype.itemsize
                      + 2 * (w1cat.size + w2g.size + w2a.size)
                      + 4 * (bvec.size + bout2.size)
                      + 4 * num_tiles * 8 * tile_b)

    const = lambda i: (0, 0)
    batch_sem = (pltpu.CORE_PARALLEL
                 if (core_parallel and num_tiles >= 2) else "parallel")

    slab = pl.pallas_call(
        _gender_kernel,
        grid=(num_tiles,),
        in_specs=[
            pl.BlockSpec((tile_b, D), lambda i: (i, 0)),     # x tile (double-buffered)
            pl.BlockSpec((D, 2 * H), const),                 # [W1_gen | W1_age] (bn0 folded)
            pl.BlockSpec((H, H), const),                     # gender W2 (bn1 folded)
            pl.BlockSpec((H, H), const),                     # age    W2 (bn1 folded)
            pl.BlockSpec((6, H), const),                     # biases + out-proj rows
            pl.BlockSpec((1, 2), const),                     # out biases
        ],
        out_specs=pl.BlockSpec((8, tile_b), lambda i: (i, 0)),
        out_shape=jax.ShapeDtypeStruct((num_tiles * 8, tile_b), jnp.float32),
        compiler_params=pltpu.CompilerParams(
            dimension_semantics=(batch_sem,),
            vmem_limit_bytes=48 * 1024 * 1024,  # fits v7x's 64 MiB VMEM with headroom
        ),
        cost_estimate=pl.CostEstimate(
            flops=flops, transcendentals=0, bytes_accessed=bytes_accessed),
    )(x, w1cat, w2g, w2a, bvec, bout2)

    slab = slab.reshape(num_tiles, 8, tile_b)
    gen = slab[:, 0, :].reshape(padded_b)[:B]
    age = slab[:, 1, :].reshape(padded_b)[:B]
    return age, gen


def _make_head_params(key, d_in, n_hidden, eps=1e-5):
    """Synthetic params for one Classifier head; eval-mode BatchNorm affines
    are folded offline into the adjacent Linear weights/biases."""
    ks = iter(jax.random.split(key, 18))

    def bn(dim):
        gamma = 1.0 + 0.1 * jax.random.normal(next(ks), (dim,), jnp.float32)
        beta = 0.1 * jax.random.normal(next(ks), (dim,), jnp.float32)
        mean = 0.1 * jax.random.normal(next(ks), (dim,), jnp.float32)
        var = 1.0 + 0.1 * jax.random.uniform(next(ks), (dim,), jnp.float32)
        s = gamma * jax.lax.rsqrt(var + eps)
        t = beta - mean * s
        return s, t

    s0, t0 = bn(d_in)
    w1 = 0.05 * jax.random.normal(next(ks), (d_in, n_hidden), jnp.float32)
    c1 = 0.01 * jax.random.normal(next(ks), (n_hidden,), jnp.float32)
    s1, t1 = bn(n_hidden)
    w2 = 0.05 * jax.random.normal(next(ks), (n_hidden, n_hidden), jnp.float32)
    c2 = 0.01 * jax.random.normal(next(ks), (n_hidden,), jnp.float32)
    s2, t2 = bn(n_hidden)
    wo = 0.05 * jax.random.normal(next(ks), (n_hidden, 1), jnp.float32)
    co = 0.01 * jax.random.normal(next(ks), (1,), jnp.float32)

    # Fold BN into the following Linear: (a*s + t) @ W + c == a @ (s[:,None]*W) + (t@W + c)
    w1f = s0[:, None] * w1
    b1f = t0 @ w1 + c1
    w2f = s1[:, None] * w2
    b2f = t1 @ w2 + c2
    wo_row = s2 * wo[:, 0]
    bof = jnp.dot(t2, wo[:, 0]) + co[0]
    return w1f, b1f, w2f, b2f, wo_row, bof


def make_params(key, d_in, n_hidden):
    kg, ka = jax.random.split(key)
    w1g, b1g, w2g, b2g, wog, bog = _make_head_params(kg, d_in, n_hidden)
    w1a, b1a, w2a, b2a, woa, boa = _make_head_params(ka, d_in, n_hidden)
    # Fused layer-1 weight: gender head in columns [:H], age head in [H:].
    w1cat = jnp.concatenate([w1g, w1a], axis=1).astype(jnp.bfloat16)        # (D, 2H)
    bvec = jnp.stack([b1g, b2g, b1a, b2a, wog, woa]).astype(jnp.float32)    # (6, H)
    bout2 = jnp.stack([bog, boa])[None, :].astype(jnp.float32)              # (1, 2)
    return (w1cat, w2g.astype(jnp.bfloat16), w2a.astype(jnp.bfloat16), bvec, bout2)


def _reference(x, params):
    """Pure-JAX reference mirroring the kernel's bf16 matmul precision."""
    if x.ndim == 3:
        x = jnp.squeeze(x, axis=1)
    w1cat, w2g, w2a, bvec, bout2 = params
    H = w2g.shape[0]
    a0 = _lrelu(x.astype(jnp.float32)).astype(jnp.bfloat16)

    def head(w1, w2, b1, b2, wo, bo):
        h = jnp.dot(a0, w1, preferred_element_type=jnp.float32) + b1
        h = _lrelu(h)
        h = jnp.dot(h.astype(jnp.bfloat16), w2, preferred_element_type=jnp.float32) + b2
        h = _lrelu(h)
        return jnp.sum(h * wo, axis=-1) + bo

    gen = head(w1cat[:, :H], w2g, bvec[0], bvec[1], bvec[4], bout2[0, 0])
    age = head(w1cat[:, H:], w2a, bvec[2], bvec[3], bvec[5], bout2[0, 1])
    return age, gen


if __name__ == "__main__":
    # Small shapes consistent with the module: ECAPA embedding dim 192,
    # 2 hidden blocks per head (real n_hidden=1024; 128 keeps the demo small
    # while staying 128-lane aligned), 1 logit per head.
    B, D, H = 8, 192, 128
    key = jax.random.PRNGKey(0)
    kx, kp, kx2 = jax.random.split(key, 3)

    x = jax.random.normal(kx, (B, 1, D), jnp.float32)   # stands in for encode(wavs)
    params = make_params(kp, D, H)

    fwd = jax.jit(simple_gender_forward)
    age, gen = fwd(x, params)
    jax.block_until_ready((age, gen))

    assert age.shape == (B,) and gen.shape == (B,)
    assert age.dtype == jnp.float32 and gen.dtype == jnp.float32

    age_ref, gen_ref = _reference(x, params)
    assert jnp.allclose(age, age_ref, atol=1e-2, rtol=1e-2)
    assert jnp.allclose(gen, gen_ref, atol=1e-2, rtol=1e-2)

    # Multi-tile + ragged-last-tile path (previously unexercised):
    # B=40 with max_tile_b=16 -> 3 tiles of 16 rows, last tile partially OOB.
    B2 = 40
    x2 = jax.random.normal(kx2, (B2, 1, D), jnp.float32)
    fwd2 = jax.jit(functools.partial(simple_gender_forward, max_tile_b=16))
    age2, gen2 = fwd2(x2, params)
    jax.block_until_ready((age2, gen2))

    assert age2.shape == (B2,) and gen2.shape == (B2,)
    age2_ref, gen2_ref = _reference(x2, params)
    assert jnp.allclose(age2, age2_ref, atol=1e-2, rtol=1e-2)
    assert jnp.allclose(gen2, gen2_ref, atol=1e-2, rtol=1e-2)

    print("KERNEL_OK")
</pallas_src>

<mosaic_0001>
module attributes {stable_mosaic.version = 11 : i64} {
  func.func @_gender_kernel(%arg0: i32, %arg1: memref<16x192xf32, #tpu.memory_space<vmem>>, %arg2: memref<192x256xbf16, #tpu.memory_space<vmem>>, %arg3: memref<128x128xbf16, #tpu.memory_space<vmem>>, %arg4: memref<128x128xbf16, #tpu.memory_space<vmem>>, %arg5: memref<6x128xf32, #tpu.memory_space<vmem>>, %arg6: memref<1x2xf32, #tpu.memory_space<vmem>>, %arg7: memref<8x16xf32, #tpu.memory_space<vmem>>) attributes {dimension_semantics = [#tpu.dimension_semantics<parallel>], iteration_bounds = array<i64: 1>, scalar_prefetch = 0 : i64, scratch_operands = 0 : i64, tpu.core_type = #tpu.core_type<tc>, window_params = [{transform_indices = @transform_0, window_bounds = array<i64: 16, 192>}, {pipeline_mode = #tpu.pipeline_mode<synchronous>, transform_indices = @transform_1, window_bounds = array<i64: 192, 256>}, {pipeline_mode = #tpu.pipeline_mode<synchronous>, transform_indices = @transform_2, window_bounds = array<i64: 128, 128>}, {pipeline_mode = #tpu.pipeline_mode<synchronous>, transform_indices = @transform_3, window_bounds = array<i64: 128, 128>}, {pipeline_mode = #tpu.pipeline_mode<synchronous>, transform_indices = @transform_4, window_bounds = array<i64: 6, 128>}, {pipeline_mode = #tpu.pipeline_mode<synchronous>, transform_indices = @transform_5, window_bounds = array<i64: 1, 2>}, {transform_indices = @transform_6, window_bounds = array<i64: 8, 16>}]} {
    %c0 = arith.constant 0 : index
    %c0_0 = arith.constant 0 : index
    %0 = vector.load %arg1[%c0, %c0_0] : memref<16x192xf32, #tpu.memory_space<vmem>>, vector<16x192xf32>
    %cst = arith.constant 0.000000e+00 : f32
    %1 = vector.broadcast %cst : f32 to vector<16x192xf32>
    %2 = arith.cmpf ogt, %0, %1 : vector<16x192xf32>
    %cst_1 = arith.constant 0.00999999977 : f32
    %3 = vector.broadcast %cst_1 : f32 to vector<16x192xf32>
    %4 = arith.mulf %3, %0 : vector<16x192xf32>
    %5 = arith.select %2, %0, %4 : vector<16x192xi1>, vector<16x192xf32>
    %6 = arith.truncf %5 : vector<16x192xf32> to vector<16x192xbf16>
    %c0_2 = arith.constant 0 : index
    %c0_3 = arith.constant 0 : index
    %7 = vector.load %arg5[%c0_2, %c0_3] : memref<6x128xf32, #tpu.memory_space<vmem>>, vector<6x128xf32>
    %c0_4 = arith.constant 0 : index
    %c0_5 = arith.constant 0 : index
    %8 = vector.load %arg6[%c0_4, %c0_5] : memref<1x2xf32, #tpu.memory_space<vmem>>, vector<1x2xf32>
    %c0_6 = arith.constant 0 : index
    %c0_7 = arith.constant 0 : index
    %9 = vector.load %arg2[%c0_6, %c0_7] : memref<192x256xbf16, #tpu.memory_space<vmem>>, vector<192x256xbf16>
    %cst_8 = arith.constant dense<0.000000e+00> : vector<16x256xf32>
    %10 = tpu.matmul %6, %9, %cst_8 {dimension_numbers = #tpu.dot_dimension_numbers<[1], [0], [0], [1], [0, 0, 1, 1], [], []>} : vector<16x192xbf16>, vector<192x256xbf16>, vector<16x256xf32> -> vector<16x256xf32>
    %11 = vector.extract_strided_slice %10 {offsets = [0, 0], sizes = [16, 128], strides = [1, 1]} : vector<16x256xf32> to vector<16x128xf32>
    %12 = vector.extract_strided_slice %7 {offsets = [0, 0], sizes = [1, 128], strides = [1, 1]} : vector<6x128xf32> to vector<1x128xf32>
    %13 = vector.extract_strided_slice %7 {offsets = [1, 0], sizes = [1, 128], strides = [1, 1]} : vector<6x128xf32> to vector<1x128xf32>
    %14 = vector.extract_strided_slice %7 {offsets = [4, 0], sizes = [1, 128], strides = [1, 1]} : vector<6x128xf32> to vector<1x128xf32>
    %15 = vector.extract_strided_slice %8 {offsets = [0, 0], sizes = [1, 1], strides = [1, 1]} : vector<1x2xf32> to vector<1x1xf32>
    %16 = vector.broadcast %12 : vector<1x128xf32> to vector<16x128xf32>
    %17 = arith.addf %11, %16 : vector<16x128xf32>
    %cst_9 = arith.constant 0.000000e+00 : f32
    %18 = vector.broadcast %cst_9 : f32 to vector<16x128xf32>
    %19 = arith.cmpf ogt, %17, %18 : vector<16x128xf32>
    %cst_10 = arith.constant 0.00999999977 : f32
    %20 = vector.broadcast %cst_10 : f32 to vector<16x128xf32>
    %21 = arith.mulf %20, %17 : vector<16x128xf32>
    %22 = arith.select %19, %17, %21 : vector<16x128xi1>, vector<16x128xf32>
    %23 = arith.truncf %22 : vector<16x128xf32> to vector<16x128xbf16>
    %c0_11 = arith.constant 0 : index
    %c0_12 = arith.constant 0 : index
    %24 = vector.load %arg3[%c0_11, %c0_12] : memref<128x128xbf16, #tpu.memory_space<vmem>>, vector<128x128xbf16>
    %cst_13 = arith.constant dense<0.000000e+00> : vector<16x128xf32>
    %25 = tpu.matmul %23, %24, %cst_13 {dimension_numbers = #tpu.dot_dimension_numbers<[1], [0], [0], [1], [0, 0, 1, 1], [], []>} : vector<16x128xbf16>, vector<128x128xbf16>, vector<16x128xf32> -> vector<16x128xf32>
    %26 = vector.broadcast %13 : vector<1x128xf32> to vector<16x128xf32>
    %27 = arith.addf %25, %26 : vector<16x128xf32>
    %cst_14 = arith.constant 0.000000e+00 : f32
    %28 = vector.broadcast %cst_14 : f32 to vector<16x128xf32>
    %29 = arith.cmpf ogt, %27, %28 : vector<16x128xf32>
    %cst_15 = arith.constant 0.00999999977 : f32
    %30 = vector.broadcast %cst_15 : f32 to vector<16x128xf32>
    %31 = arith.mulf %30, %27 : vector<16x128xf32>
    %32 = arith.select %29, %27, %31 : vector<16x128xi1>, vector<16x128xf32>
    %33 = vector.broadcast %14 : vector<1x128xf32> to vector<16x128xf32>
    %34 = arith.mulf %32, %33 : vector<16x128xf32>
    %cst_16 = arith.constant dense<0.000000e+00> : vector<16xf32>
    %35 = vector.multi_reduction <add>, %34, %cst_16 [1] : vector<16x128xf32> to vector<16xf32>
    %36 = vector.shape_cast %35 : vector<16xf32> to vector<1x16xf32>
    %37 = vector.broadcast %15 : vector<1x1xf32> to vector<1x16xf32>
    %38 = arith.addf %36, %37 : vector<1x16xf32>
    %39 = vector.extract_strided_slice %10 {offsets = [0, 128], sizes = [16, 128], strides = [1, 1]} : vector<16x256xf32> to vector<16x128xf32>
    %40 = vector.extract_strided_slice %7 {offsets = [2, 0], sizes = [1, 128], strides = [1, 1]} : vector<6x128xf32> to vector<1x128xf32>
    %41 = vector.extract_strided_slice %7 {offsets = [3, 0], sizes = [1, 128], strides = [1, 1]} : vector<6x128xf32> to vector<1x128xf32>
    %42 = vector.extract_strided_slice %7 {offsets = [5, 0], sizes = [1, 128], strides = [1, 1]} : vector<6x128xf32> to vector<1x128xf32>
    %43 = vector.extract_strided_slice %8 {offsets = [0, 1], sizes = [1, 1], strides = [1, 1]} : vector<1x2xf32> to vector<1x1xf32>
    %44 = vector.broadcast %40 : vector<1x128xf32> to vector<16x128xf32>
    %45 = arith.addf %39, %44 : vector<16x128xf32>
    %cst_17 = arith.constant 0.000000e+00 : f32
    %46 = vector.broadcast %cst_17 : f32 to vector<16x128xf32>
    %47 = arith.cmpf ogt, %45, %46 : vector<16x128xf32>
    %cst_18 = arith.constant 0.00999999977 : f32
    %48 = vector.broadcast %cst_18 : f32 to vector<16x128xf32>
    %49 = arith.mulf %48, %45 : vector<16x128xf32>
    %50 = arith.select %47, %45, %49 : vector<16x128xi1>, vector<16x128xf32>
    %51 = arith.truncf %50 : vector<16x128xf32> to vector<16x128xbf16>
    %c0_19 = arith.constant 0 : index
    %c0_20 = arith.constant 0 : index
    %52 = vector.load %arg4[%c0_19, %c0_20] : memref<128x128xbf16, #tpu.memory_space<vmem>>, vector<128x128xbf16>
    %cst_21 = arith.constant dense<0.000000e+00> : vector<16x128xf32>
    %53 = tpu.matmul %51, %52, %cst_21 {dimension_numbers = #tpu.dot_dimension_numbers<[1], [0], [0], [1], [0, 0, 1, 1], [], []>} : vector<16x128xbf16>, vector<128x128xbf16>, vector<16x128xf32> -> vector<16x128xf32>
    %54 = vector.broadcast %41 : vector<1x128xf32> to vector<16x128xf32>
    %55 = arith.addf %53, %54 : vector<16x128xf32>
    %cst_22 = arith.constant 0.000000e+00 : f32
    %56 = vector.broadcast %cst_22 : f32 to vector<16x128xf32>
    %57 = arith.cmpf ogt, %55, %56 : vector<16x128xf32>
    %cst_23 = arith.constant 0.00999999977 : f32
    %58 = vector.broadcast %cst_23 : f32 to vector<16x128xf32>
    %59 = arith.mulf %58, %55 : vector<16x128xf32>
    %60 = arith.select %57, %55, %59 : vector<16x128xi1>, vector<16x128xf32>
    %61 = vector.broadcast %42 : vector<1x128xf32> to vector<16x128xf32>
    %62 = arith.mulf %60, %61 : vector<16x128xf32>
    %cst_24 = arith.constant dense<0.000000e+00> : vector<16xf32>
    %63 = vector.multi_reduction <add>, %62, %cst_24 [1] : vector<16x128xf32> to vector<16xf32>
    %64 = vector.shape_cast %63 : vector<16xf32> to vector<1x16xf32>
    %65 = vector.broadcast %43 : vector<1x1xf32> to vector<1x16xf32>
    %66 = arith.addf %64, %65 : vector<1x16xf32>
    %67 = tpu.concatenate %38, %66 in 0 : vector<1x16xf32>, vector<1x16xf32> -> vector<2x16xf32>
    %c0_25 = arith.constant 0 : index
    %c0_26 = arith.constant 0 : index
    %68 = vector.load %arg7[%c0_25, %c0_26] : memref<8x16xf32, #tpu.memory_space<vmem>>, vector<2x16xf32>
    tpu.vector_store %arg7[%c0_25, %c0_26], %67 {strides = array<i32>} : memref<8x16xf32, #tpu.memory_space<vmem>>, vector<2x16xf32>,
    return
  }
  func.func @transform_0(%arg0: i32) -> (i32, i32) {
    %c0_i32 = arith.constant 0 : i32
    %c0_i32_0 = arith.constant 0 : i32
    return %arg0, %c0_i32 : i32, i32
  }
  func.func @transform_1(%arg0: i32) -> (i32, i32) {
    %c0_i32 = arith.constant 0 : i32
    %c0_i32_0 = arith.constant 0 : i32
    %c0_i32_1 = arith.constant 0 : i32
    return %c0_i32, %c0_i32_0 : i32, i32
  }
  func.func @transform_2(%arg0: i32) -> (i32, i32) {
    %c0_i32 = arith.constant 0 : i32
    %c0_i32_0 = arith.constant 0 : i32
    %c0_i32_1 = arith.constant 0 : i32
    return %c0_i32, %c0_i32_0 : i32, i32
  }
  func.func @transform_3(%arg0: i32) -> (i32, i32) {
    %c0_i32 = arith.constant 0 : i32
    %c0_i32_0 = arith.constant 0 : i32
    %c0_i32_1 = arith.constant 0 : i32
    return %c0_i32, %c0_i32_0 : i32, i32
  }
  func.func @transform_4(%arg0: i32) -> (i32, i32) {
    %c0_i32 = arith.constant 0 : i32
    %c0_i32_0 = arith.constant 0 : i32
    %c0_i32_1 = arith.constant 0 : i32
    return %c0_i32, %c0_i32_0 : i32, i32
  }
  func.func @transform_5(%arg0: i32) -> (i32, i32) {
    %c0_i32 = arith.constant 0 : i32
    %c0_i32_0 = arith.constant 0 : i32
    %c0_i32_1 = arith.constant 0 : i32
    return %c0_i32, %c0_i32_0 : i32, i32
  }
  func.func @transform_6(%arg0: i32) -> (i32, i32) {
    %c0_i32 = arith.constant 0 : i32
    %c0_i32_0 = arith.constant 0 : i32
    return %arg0, %c0_i32 : i32, i32
  }
}

</mosaic_0001>

<bundles_post_ra>
// kernel: simple_gender_forward.1
= control target key start
LH: loop header
LB: loop body
LE: loop exit
PB: predicated region body
PF: predicated region fallthrough
CT: control target
= control target key end

     0   :  { %11 = vsyncpa [#allocation3], 0  ;;  %s1000_s0 = inlined_call_operand.vmem [shape: f32[8,192], index: 0, kind: input, shape index: {}]   ;;  %s1001_s1 = inlined_call_operand.hbm [shape: bf16[192,256], index: 1, kind: input, shape index: {}]   ;;  %s1002_s2 = inlined_call_operand.hbm [shape: bf16[128,128], index: 2, kind: input, shape index: {}]   ;;  %s1003_s3 = inlined_call_operand.hbm [shape: bf16[128,128], index: 3, kind: input, shape index: {}]   ;;  %s1004_s4 = inlined_call_operand.vmem [shape: f32[6,128], index: 4, kind: input, shape index: {}]   ;;  %s1005_s5 = inlined_call_operand.vmem [shape: f32[1,2], index: 5, kind: input, shape index: {}]   ;;  %s1006_s6 = inlined_call_operand.vmem [shape: f32[8,16], index: 6, kind: output, shape index: {}]  }
   0x1   :  { %12 = vsyncpa [#allocation5], 0  ;;  %s846_s21 = smov [#allocation4]   ;;  %s776_s25 = scalar_lea.hbm %s1002_s2, 1024 }
   0x2   :  { %s32_s22 = sshll.u32 %s846_s21, 4  ;;  %p777_p0 = scmp.ne.s32.totalorder %s1002_s2, %s776_s25  ;;  %s33_s22 = int_to_ptr.vmem [resolvable:$true] %s32_s22 }
   0x3   :  { %p780_p1 = scmp.lt.u32.totalorder %s776_s25, %s1002_s2 }
   0x5   :  { %p782_p2 = pnand %p780_p1, %p777_p0 }
   0x7   :  { %785 = shalt.err (!%p782_p2)
}
   0x8   :  { %s786_s30 = scalar_lea.vmem %s33_s22, 1024  ;;  %p791_p4 = scmp.lt.s32.totalorder %s33_s22, %s33_s22 }
   0x9   :  { %p787_p3 = scmp.ne.s32.totalorder %s33_s22, %s786_s30  ;;  %p792_p5 = scmp.lt.s32.totalorder %s786_s30, %s786_s30 }
   0xb   :  { %p793_p6 = por %p792_p5, %p791_p4 }
   0xd   :  { %p794_p7 = pnand %p793_p6, %p787_p3 }
   0xf   :  { %797 = shalt.err (!%p794_p7)
}
  0x10   :  { %s847_s7 = smov 64   ;;  %s848_s8 = smov 4  }
  0x11   :  { %38 = dma.hbm_to_vmem [thread:$0]  %s1002_s2, 1024, %s33_s22, [#allocation5], %s847_s7, %s847_s7, %s848_s8  }
  0x12   :  { %s849_s11 = smov [#allocation2]   ;;  %s798_s15 = scalar_lea.hbm %s1001_s1, 3072 }
  0x13   :  { %s20_s12 = sshll.u32 %s849_s11, 4  ;;  %p799_p8 = scmp.ne.s32.totalorder %s1001_s1, %s798_s15  ;;  %s21_s12 = int_to_ptr.vmem [resolvable:$true] %s20_s12 }
  0x14   :  { %p802_p9 = scmp.lt.u32.totalorder %s798_s15, %s1001_s1 }
  0x16   :  { %p804_p10 = pnand %p802_p9, %p799_p8 }
  0x18   :  { %807 = shalt.err (!%p804_p10)
}
  0x19   :  { %s808_s20 = scalar_lea.vmem %s21_s12, 3072  ;;  %p813_p12 = scmp.lt.s32.totalorder %s21_s12, %s21_s12 }
  0x1a   :  { %p809_p11 = scmp.ne.s32.totalorder %s21_s12, %s808_s20  ;;  %p814_p13 = scmp.lt.s32.totalorder %s808_s20, %s808_s20 }
  0x1c   :  { %p815_p0 = por %p814_p13, %p813_p12 }
  0x1e   :  { %p816_p1 = pnand %p815_p0, %p809_p11 }
  0x20   :  { %819 = shalt.err (!%p816_p1)
}
  0x21   :  { %s850_s2 = smov 128   ;;  %s851_s21 = smov 8  }
  0x22   :  { %26 = dma.hbm_to_vmem [thread:$0]  %s1001_s1, 3072, %s21_s12, [#allocation3], %s850_s2, %s850_s2, %s851_s21  }
  0x23   :  { %s852_s24 = smov [#allocation6]   ;;  %s820_s28 = scalar_lea.hbm %s1003_s3, 1024 }
  0x24   :  { %s44_s25 = sshll.u32 %s852_s24, 4  ;;  %p821_p2 = scmp.ne.s32.totalorder %s1003_s3, %s820_s28  ;;  %s45_s25 = int_to_ptr.vmem [resolvable:$true] %s44_s25 }
  0x25   :  { %p824_p3 = scmp.lt.u32.totalorder %s820_s28, %s1003_s3 }
  0x27   :  { %p826_p4 = pnand %p824_p3, %p821_p2 }
  0x29   :  { %829 = shalt.err (!%p826_p4)
}
  0x2a   :  { %s830_s11 = scalar_lea.vmem %s45_s25, 1024  ;;  %p835_p6 = scmp.lt.s32.totalorder %s45_s25, %s45_s25 }
  0x2b   :  { %p831_p5 = scmp.ne.s32.totalorder %s45_s25, %s830_s11  ;;  %p836_p7 = scmp.lt.s32.totalorder %s830_s11, %s830_s11 }
  0x2d   :  { %p837_p8 = por %p836_p7, %p835_p6 }
  0x2f   :  { %p838_p9 = pnand %p837_p8, %p831_p5 }
  0x31   :  { %841 = shalt.err (!%p838_p9)
}
  0x32   :  { %50 = dma.hbm_to_vmem [thread:$0]  %s1003_s3, 1024, %s45_s25, [#allocation5], %s847_s7, %s847_s7, %s848_s8  }
  0x33   :  { %842 = dma.done.wait [#allocation3], 3072  }
  0x34   :  { %843 = vsyncadd [#allocation3], 4294964224 }
  0x35   :  { %844 = dma.done.wait [#allocation5], 2048  }
  0x36   :  { %845 = vsyncadd [#allocation5], 4294965248  ;;  %v853_v0 = vmov 0.0   ;;  %v724_v1 = vld [vmem:[#allocation2 + $0x4] ss:$8 sps:$4 sm:$0xff]   ;;  %v68_v13 = vld [vmem:[%s1000_s0 + $0x18] sm:$0xff]  ;;  %v276_v47 = vlaneseq }
  0x37   :  { %670 = vmatprep.subr.bf16.mxu1 %v853_v0  ;;  %v726_v2 = vld [vmem:[#allocation2] ss:$8 sps:$4 sm:$0xff]   ;;  %233 = vmatprep.subr.bf16.mxu0 %v724_v1  ;;  %v727_v3 = vld [vmem:[#allocation2 + $0x14] ss:$8 sps:$4 sm:$0xff]   ;;  %v729_v4 = vld [vmem:[#allocation2 + $0x10] ss:$8 sps:$4 sm:$0xff]  }
  0x38   :  { %234 = vmatpush1.bf16.msra.mxu0 %v726_v2  ;;  %v730_v5 = vld [vmem:[#allocation2 + $0x24] ss:$8 sps:$4 sm:$0xff]   ;;  %v732_v6 = vld [vmem:[#allocation2 + $0x20] ss:$8 sps:$4 sm:$0xff]   ;;  %v733_v7 = vld [vmem:[#allocation2 + $0x34] ss:$8 sps:$4 sm:$0xff]  }
  0x39   :  { %235 = vmatprep.subr.bf16.mxu0 %v727_v3  ;;  %v735_v8 = vld [vmem:[#allocation2 + $0x30] ss:$8 sps:$4 sm:$0xff]   ;;  %v736_v9 = vld [vmem:[#allocation2 + $0x44] ss:$8 sps:$4 sm:$0xff]   ;;  %v738_v10 = vld [vmem:[#allocation2 + $0x40] ss:$8 sps:$4 sm:$0xff]  }
  0x3a   :  { %v739_v11 = vld [vmem:[#allocation2 + $0x54] ss:$8 sps:$4 sm:$0xff]   ;;  %v66_v12 = vld [vmem:[%s1000_s0 + $0x8] sm:$0xff]  ;;  %vm72_vm1 = vcmp.gt.f32.partialorder %v68_v13, 0.0  ;;  %v76_v15 = vmul.f32 0.01, %v68_v13 }
  0x3b   :  { %vm70_vm0 = vcmp.gt.f32.partialorder %v66_v12, 0.0  ;;  %v74_v14 = vmul.f32 0.01, %v66_v12  ;;  %v741_v16 = vld [vmem:[#allocation2 + $0x50] ss:$8 sps:$4 sm:$0xff]   ;;  %vm229_vm2 = vcmask 523264  }
  0x3c   :  { %236 = vmatpush1.bf16.msra.mxu0 %v729_v4  ;;  %v80_v18 = vsel %vm72_vm1, %v68_v13, %v76_v15  ;;  %v760_v19 = vld [vmem:[#allocation4] sm:$0xff]   ;;  %v761_v22 = vld [vmem:[#allocation4 + $0x8] sm:$0xff]   ;;  %v745_v24 = vld [vmem:[#allocation2 + $0x74] ss:$8 sps:$4 sm:$0xff]   ;;  %vm854_vm5 = vmmov 0   ;;  %v958_v48 = vshrl.u32 %v276_v47, 7 }
  0x3d   :  { %237 = vmatprep.subr.bf16.mxu0 %v730_v5  ;;  %v78_v17 = vsel %vm70_vm0, %v66_v12, %v74_v14  ;;  %v742_v20 = vld [vmem:[#allocation2 + $0x64] ss:$8 sps:$4 sm:$0xff]   ;;  %671 = vmatpush3.bf16.msra.mxu1 %v760_v19  ;;  %v744_v23 = vld [vmem:[#allocation2 + $0x60] ss:$8 sps:$4 sm:$0xff]   ;;  %v747_v25 = vld [vmem:[#allocation2 + $0x70] ss:$8 sps:$4 sm:$0xff]  }
  0x3e   :  { %v82_v21 = vpack.c.bf16 %v80_v18, %v78_v17  ;;  %672 = vmatprep.subr.bf16.mxu1 %v853_v0  ;;  %v762_v26 = vld [vmem:[#allocation4 + $0x10] sm:$0xff]   ;;  %v748_v27 = vld [vmem:[#allocation2 + $0x84] ss:$8 sps:$4 sm:$0xff]   ;;  %v763_v28 = vld [vmem:[#allocation4 + $0x18] sm:$0xff]   ;;  %686 = vmatprep.mubr.msk.bf16.mxu1 %vm854_vm5, %v853_v0  ;;  %v961_v49 = vsub.s32 0, %v958_v48  ;;  %v427_v51 = vsub.s32 2, %v958_v48 }
  0x3f   :  { %v750_v29 = vld [vmem:[#allocation2 + $0x80] ss:$8 sps:$4 sm:$0xff]   ;;  %v751_v30 = vld [vmem:[#allocation2 + $0x94] ss:$8 sps:$4 sm:$0xff]   ;;  %v753_v32 = vld [vmem:[#allocation2 + $0x90] ss:$8 sps:$4 sm:$0xff]  }
  0x40   :  { %238 = vmatpush1.bf16.msra.mxu0 %v732_v6  ;;  %635 = vmatprep.mubr.msk.bf16.mxu0 %vm229_vm2, %v82_v21  ;;  %v764_v31 = vld [vmem:[#allocation4 + $0x20] sm:$0xff]   ;;  %v67_v35 = vld [vmem:[%s1000_s0 + $0x10] sm:$0xff]  ;;  %v765_v36 = vld [vmem:[#allocation4 + $0x28] sm:$0xff]   ;;  %v855_v17 = vmov 0   ;;  %v856_v18 = vmov 1   ;;  %v307_v19 = vsub.s32 1, %v958_v48 }
  0x41   :  { %239 = vmatprep.subr.bf16.mxu0 %v733_v7  ;;  %673 = vmatpush3.bf16.msra.mxu1 %v761_v22  ;;  %v754_v33 = vld [vmem:[#allocation2 + $0xa4] ss:$8 sps:$4 sm:$0xff]   ;;  %v756_v37 = vld [vmem:[#allocation2 + $0xa0] ss:$8 sps:$4 sm:$0xff]   ;;  %v75_v39 = vmul.f32 0.01, %v67_v35 }
  0x42   :  { %674 = vmatprep.subr.bf16.mxu1 %v853_v0  ;;  %v65_v34 = vld [vmem:[%s1000_s0] sm:$0xff]  ;;  %v757_v40 = vld [vmem:[#allocation2 + $0xb4] ss:$8 sps:$4 sm:$0xff]   ;;  %vm71_vm4 = vcmp.gt.f32.partialorder %v67_v35, 0.0  ;;  %v759_v41 = vld [vmem:[#allocation2 + $0xb0] ss:$8 sps:$4 sm:$0xff]   ;;  %721 = vset.pattern.permute.xlu0 %v855_v17 }
  0x43   :  { %v73_v38 = vmul.f32 0.01, %v65_v34  ;;  %vm69_vm3 = vcmp.gt.f32.partialorder %v65_v34, 0.0  ;;  %v79_v43 = vsel %vm71_vm4, %v67_v35, %v75_v39  ;;  %v766_v45 = vld [vmem:[#allocation4 + $0x30] sm:$0xff]   ;;  %v767_v46 = vld [vmem:[#allocation4 + $0x38] sm:$0xff]   ;;  %v768_v5 = vld [vmem:[#allocation6] sm:$0xff]   ;;  %722 = vset.pattern.permute.xlu1 %v856_v18 }
  0x44   :  { %240 = vmatpush1.bf16.msra.mxu0 %v735_v8  ;;  %v966_v50 = vld [vmem:[%s1004_s4] sm:$0x3f]  ;;  %v771_v12 = vld [vmem:[#allocation6 + $0x18] sm:$0xff]   ;;  %v773_v14 = vld [vmem:[#allocation6 + $0x28] sm:$0xff]   ;;  %v406_v21 = vsub.s32 4, %v958_v48  ;;  %vm586_vm14 = vcmask 130112  }
  0x45   :  { %241 = vmatprep.subr.bf16.mxu0 %v736_v9  ;;  %675 = vmatpush3.bf16.msra.mxu1 %v762_v26  ;;  %v77_v42 = vsel %vm69_vm3, %v65_v34, %v73_v38  ;;  %v279_v52 = vrot.slane %v966_v50, %v961_v49  ;;  %v428_v53 = vrot.slane %v966_v50, %v427_v51  ;;  %v772_v13 = vld [vmem:[#allocation6 + $0x20] sm:$0xff]   ;;  %v774_v15 = vld [vmem:[#allocation6 + $0x30] sm:$0xff]   ;;  %v456_v34 = vsub.s32 3, %v958_v48 }
  0x46   :  { %676 = vmatprep.subr.bf16.mxu1 %v853_v0  ;;  %v81_v44 = vpack.c.bf16 %v79_v43, %v77_v42  ;;  %v407_v26 = vrot.slane %v966_v50, %v406_v21  ;;  %vm601_vm15 = vcmask 1040384   ;;  %vm603_vm0 = vcmask 123904  }
  0x47   :  { %v457_v35 = vrot.slane %v966_v50, %v456_v34 }
  0x48   :  { %242 = vmatpush1.bf16.msra.mxu0 %v738_v10  ;;  %v769_v10 = vld [vmem:[#allocation6 + $0x8] sm:$0xff]  }
  0x49   :  { %243 = vmatprep.subr.bf16.mxu0 %v739_v11  ;;  %677 = vmatpush3.bf16.msra.mxu1 %v763_v28  ;;  %v770_v11 = vld [vmem:[#allocation6 + $0x10] sm:$0xff]  }
  0x4a   :  { %678 = vmatprep.subr.bf16.mxu1 %v853_v0 }
  0x4c   :  { %244 = vmatpush1.bf16.msra.mxu0 %v741_v16  ;;  %v775_v16 = vld [vmem:[#allocation6 + $0x38] sm:$0xff]  }
  0x4d   :  { %245 = vmatprep.subr.bf16.mxu0 %v742_v20  ;;  %679 = vmatpush3.bf16.msra.mxu1 %v764_v31  ;;  %v308_v20 = vrot.slane %v966_v50, %v307_v19 }
  0x4e   :  { %680 = vmatprep.subr.bf16.mxu1 %v853_v0 }
  0x50   :  { %246 = vmatpush1.bf16.msra.mxu0 %v744_v23 }
  0x51   :  { %247 = vmatprep.subr.bf16.mxu0 %v745_v24  ;;  %681 = vmatpush3.bf16.msra.mxu1 %v765_v36  ;;  %v555_v36 = vsub.s32 5, %v958_v48 }
  0x52   :  { %682 = vmatprep.subr.bf16.mxu1 %v853_v0 }
  0x53   :  { %v556_v42 = vrot.slane %v966_v50, %v555_v36 }
  0x54   :  { %248 = vmatpush1.bf16.msra.mxu0 %v747_v25 }
  0x55   :  { %249 = vmatprep.subr.bf16.mxu0 %v748_v27  ;;  %683 = vmatpush3.bf16.msra.mxu1 %v766_v45 }
  0x56   :  { %684 = vmatprep.subr.bf16.mxu1 %v853_v0 }
  0x58   :  { %250 = vmatpush1.bf16.msra.mxu0 %v750_v29 }
  0x59   :  { %251 = vmatprep.subr.bf16.mxu0 %v751_v30  ;;  %685 = vmatpush3.bf16.msra.mxu1 %v767_v46 }
  0x5a   :  { %690 = vmatprep.subr.bf16.mxu1 %v853_v0 }
  0x5c   :  { %252 = vmatpush1.bf16.msra.mxu0 %v753_v32 }
  0x5d   :  { %253 = vmatprep.subr.bf16.mxu0 %v754_v33 }
  0x60   :  { %254 = vmatpush1.bf16.msra.mxu0 %v756_v37  ;;  %v84_v37 = vld [vmem:[%s1005_s5] sm:$0x1] }
  0x61   :  { %255 = vmatprep.subr.bf16.mxu0 %v757_v40 }
  0x64   :  { %256 = vmatpush1.bf16.msra.mxu0 %v759_v41 }
  0x67   :  { %266 = vmatmul.mubr.bf16.vlgmr.msra.gmra.mrb[0].mxu0 %v81_v44 }
 0x13a   :  { %v267_v54 = vpop.f32.mrb[0].mxu0 }
 0x13b   :  { %v280_v55 = vadd.f32 %v279_v52, %v267_v54  ;;  %v269_v56 = vpop.f32.mrb[1].mxu0 }
 0x13c   :  { %v429_v57 = vadd.f32 %v428_v53, %v269_v56  ;;  %v271_v58 = vpop.f32.mrb[2].mxu0 }
 0x13d   :  { %v284_v59 = vmul.f32 0.01, %v280_v55  ;;  %v281_v60 = vadd.f32 %v279_v52, %v271_v58  ;;  %v273_v61 = vpop.f32.mrb[3].mxu0  ;;  %vm282_vm6 = vcmp.gt.f32.partialorder %v280_v55, 0.0 }
 0x13e   :  { %v433_v62 = vmul.f32 0.01, %v429_v57  ;;  %v430_v63 = vadd.f32 %v428_v53, %v273_v61  ;;  %vm431_vm7 = vcmp.gt.f32.partialorder %v429_v57, 0.0 }
 0x13f   :  { %vm283_vm8 = vcmp.gt.f32.partialorder %v281_v60, 0.0  ;;  %v285_v1 = vmul.f32 0.01, %v281_v60  ;;  %v286_v3 = vsel %vm282_vm6, %v280_v55, %v284_v59 }
 0x140   :  { %vm432_vm9 = vcmp.gt.f32.partialorder %v430_v63, 0.0  ;;  %v434_v2 = vmul.f32 0.01, %v430_v63  ;;  %v435_v6 = vsel %vm431_vm7, %v429_v57, %v433_v62  ;;  %v576_v57 = vand.u32 127, %v276_v47 }
 0x141   :  { %v287_v4 = vsel %vm283_vm8, %v281_v60, %v285_v1 }
 0x142   :  { %v436_v7 = vsel %vm432_vm9, %v430_v63, %v434_v2  ;;  %v288_v8 = vpack.c.bf16 %v287_v4, %v286_v3  ;;  %v581_v59 = vadd.s32 4294967288, %v576_v57  ;;  %v579_v62 = vsub.s32 %v576_v57, %v958_v48 }
 0x143   :  { %v437_v9 = vpack.c.bf16 %v436_v7, %v435_v6 }
 0x144   :  { %687 = vmatmul.mubr.bf16.vlgmr.msra.gmra.mrb[0].mxu1 %v288_v8  ;;  %v584_v63 = vsub.s32 %v581_v59, %v958_v48 }
 0x145   :  { %691 = vmatpush3.bf16.msra.mxu1 %v768_v5  ;;  %706 = vmatprep.mubr.msk.bf16.mxu1 %vm854_vm5, %v853_v0 }
 0x146   :  { %692 = vmatprep.subr.bf16.mxu1 %v853_v0 }
 0x149   :  { %693 = vmatpush3.bf16.msra.mxu1 %v769_v10 }
 0x14a   :  { %694 = vmatprep.subr.bf16.mxu1 %v853_v0 }
 0x14d   :  { %695 = vmatpush3.bf16.msra.mxu1 %v770_v11 }
 0x14e   :  { %696 = vmatprep.subr.bf16.mxu1 %v853_v0 }
 0x151   :  { %697 = vmatpush3.bf16.msra.mxu1 %v771_v12 }
 0x152   :  { %698 = vmatprep.subr.bf16.mxu1 %v853_v0 }
 0x155   :  { %699 = vmatpush3.bf16.msra.mxu1 %v772_v13 }
 0x156   :  { %700 = vmatprep.subr.bf16.mxu1 %v853_v0 }
 0x159   :  { %701 = vmatpush3.bf16.msra.mxu1 %v773_v14 }
 0x15a   :  { %702 = vmatprep.subr.bf16.mxu1 %v853_v0 }
 0x15d   :  { %703 = vmatpush3.bf16.msra.mxu1 %v774_v15 }
 0x15e   :  { %704 = vmatprep.subr.bf16.mxu1 %v853_v0 }
 0x161   :  { %705 = vmatpush3.bf16.msra.mxu1 %v775_v16 }
 0x164   :  { %707 = vmatmul.mubr.bf16.vlgmr.msra.gmra.mrb[4].mxu1 %v437_v9 }
 0x217   :  { %v391_v22 = vpop.f32.mrb[0].mxu1 }
 0x218   :  { %v392_v23 = vadd.f32 %v391_v22, %v308_v20  ;;  %v688_v24 = vpop.f32.mrb[1].mxu1 }
 0x219   :  { %v394_v25 = vpop.f32.mrb[2].mxu1 }
 0x21a   :  { %v400_v27 = vmul.f32 0.01, %v392_v23  ;;  %v395_v0 = vadd.f32 %v394_v25, %v308_v20  ;;  %v689_v28 = vpop.f32.mrb[3].mxu1  ;;  %vm398_vm10 = vcmp.gt.f32.partialorder %v392_v23, 0.0 }
 0x21c   :  { %v401_v29 = vmul.f32 0.01, %v395_v0  ;;  %v402_v30 = vsel %vm398_vm10, %v392_v23, %v400_v27  ;;  %vm399_vm11 = vcmp.gt.f32.partialorder %v395_v0, 0.0 }
 0x21d   :  { %v408_v31 = vmul.f32 %v407_v26, %v402_v30 }
 0x21e   :  { %v403_v32 = vsel %vm399_vm11, %v395_v0, %v401_v29 }
 0x21f   :  { %410 = vadd.xlane.f32.xlu0 %v408_v31  ;;  %v409_v33 = vmul.f32 %v407_v26, %v403_v32 }
 0x223   :  { %412 = vadd.xlane.f32.xlu0 %v409_v33 }
 0x237   :  { %v540_v38 = vpop.f32.mrb[4].mxu1 }
 0x238   :  { %v541_v39 = vadd.f32 %v540_v38, %v457_v35  ;;  %v708_v40 = vpop.f32.mrb[5].mxu1 }
 0x239   :  { %v543_v41 = vpop.f32.mrb[6].mxu1  ;;  %416 = vperm.xlu0 %721, %v84_v37  }
 0x23a   :  { %v549_v43 = vmul.f32 0.01, %v541_v39  ;;  %v544_v44 = vadd.f32 %v543_v41, %v457_v35  ;;  %v709_v45 = vpop.f32.mrb[7].mxu1  ;;  %vm547_vm12 = vcmp.gt.f32.partialorder %v541_v39, 0.0 }
 0x23c   :  { %v550_v46 = vmul.f32 0.01, %v544_v44  ;;  %v551_v51 = vsel %vm547_vm12, %v541_v39, %v549_v43  ;;  %vm548_vm13 = vcmp.gt.f32.partialorder %v544_v44, 0.0 }
 0x23d   :  { %v557_v52 = vmul.f32 %v556_v42, %v551_v51  ;;  %723 = vset.pattern.permute.xlu0 %v856_v18 }
 0x23e   :  { %v552_v53 = vsel %vm548_vm13, %v544_v44, %v550_v46 }
 0x23f   :  { %559 = vadd.xlane.f32.xlu1 %v557_v52  ;;  %v558_v54 = vmul.f32 %v556_v42, %v552_v53 }
 0x243   :  { %561 = vadd.xlane.f32.xlu1 %v558_v54 }
 0x254   :  { %564 = vperm.xlu1 %722, %v84_v37  }
 0x2ac   :  { %v411_v55 = vpop.xlane.xlu0 %410 }
 0x2b0   :  { %v413_v56 = vpop.xlane.xlu0 %412 }
 0x2b8   :  { %v417_v58 = vpop.permute.xlu0 %416 }
 0x2b9   :  { %v422_v60 = vrot.slane %v417_v58, %v961_v49 }
 0x2bb   :  { %v423_v1 = vadd.f32 %v422_v60, %v411_v55  ;;  %v424_v2 = vadd.f32 %v422_v60, %v413_v56 }
 0x2bd   :  { %v580_v5 = vrot.slane %v423_v1, %v579_v62  ;;  %v585_v6 = vrot.slane %v424_v2, %v584_v63 }
 0x2bf   :  { %v587_v10 = vsel %vm586_vm14, %v585_v6, %v580_v5 }
 0x2cc   :  { %v560_v50 = vpop.xlane.xlu1 %559 }
 0x2d0   :  { %v562_v61 = vpop.xlane.xlu1 %561 }
 0x2d4   :  { %v565_v3 = vpop.permute.xlu1 %564 }
 0x2d5   :  { %v570_v4 = vrot.slane %v565_v3, %v961_v49 }
 0x2d7   :  { %v571_v7 = vadd.f32 %v570_v4, %v560_v50  ;;  %v572_v8 = vadd.f32 %v570_v4, %v562_v61 }
 0x2d9   :  { %v594_v47 = vrot.slane %v571_v7, %v579_v62  ;;  %v598_v9 = vrot.slane %v572_v8, %v584_v63 }
 0x2db   :  { %v599_v11 = vsel %vm586_vm14, %v598_v9, %v594_v47 }
 0x2dc   :  { %v602_v12 = vsel %vm601_vm15, %v587_v10, %v599_v11 }
 0x2dd   :  { %604 = vst.msk [vmem:[%s1006_s6] sm:$0x3] %vm603_vm0, %v602_v12 }
 0x2de   :  { %609 = vsyncpa [#allocation3], 1 }
 0x2df   :  { %610 = vsyncpa [#allocation5], 1 }

</bundles_post_ra>
